<compile_context>
chip_gen: v7x
topology: tpu7x:2x2x1
jax: 0.10.0
libtpu: 0.0.40
codegen_flags: <defaults>
</compile_context>

<pallas_src>
import jax
import jax.numpy as jnp
from jax.experimental import pallas as pl
from jax.experimental.pallas import tpu as pltpu


def _round_up(n, m):
    return ((n + m - 1) // m) * m


def _inversed_dynamics_kernel(t_ref, x_ref, w1_ref, b1_ref, neg_w2_ref,
                              neg_b2_ref, c_ref, neg_dx_ref, neg_dlogp_ref):
    # Inverse-time scalar t_rev = t_max - t, precomputed in the wrapper and
    # read from SMEM at runtime (no trace-time t_max baking).
    t_rev = t_ref[0]

    # First layer: bf16 MXU ingest (x cast here, not in a wrapper HBM pass),
    # f32 accumulation.
    x_bf = x_ref[...].astype(jnp.bfloat16)
    h = jnp.dot(x_bf, w1_ref[...], preferred_element_type=jnp.float32)
    h = h + t_rev * b1_ref[...]
    a = jnp.tanh(h)  # EUP, f32

    # Second layer.  The InversedDynamics output negation is folded into
    # (-W2, -b2) at parameter-prep time, so this store IS -dx directly.
    neg_dx_ref[...] = (
        jnp.dot(a.astype(jnp.bfloat16), neg_w2_ref[...],
                preferred_element_type=jnp.float32)
        + neg_b2_ref[...])

    # Exact divergence (f32): div = sum_k (1 - a_k^2) * c_k.
    # dlogp = -div and InversedDynamics returns -dlogp, so -dlogp == div:
    # store div directly (double negation removed).  Narrow (tb, 1) store:
    # only 4 B/row of HBM writeback for this stream.
    div = jnp.sum((1.0 - a * a) * c_ref[...], axis=-1, keepdims=True)
    neg_dlogp_ref[...] = div


def prepare_inversed_dynamics_params(w1, b1, w2, b2):
    """Call-once parameter prep (hoisted out of the per-step wrapper).

    Casts MXU weight operands to bf16, folds the InversedDynamics negation
    into (-W2, -b2), and precomputes the exact-divergence trace coefficients
    c in f32.  No padding is needed: weight blocks use the full-array-dim
    BlockSpec exemption.
    """
    n_dim, hidden = w1.shape
    w1f = w1.astype(jnp.float32)
    w2f = w2.astype(jnp.float32)
    # c_k = sum_i W1[i,k] * W2[k,i]  — kept f32 for dlogp accuracy.
    c = jnp.sum(w1f * w2f.T, axis=0)

    return {
        "w1": w1f.astype(jnp.bfloat16),                       # (n_dim, hidden)
        "b1": b1.astype(jnp.float32).reshape(1, hidden),      # (1, hidden)
        "neg_w2": (-w2f).astype(jnp.bfloat16),                # (hidden, n_dim)
        "neg_b2": (-b2.astype(jnp.float32)).reshape(1, n_dim),
        "c": c.reshape(1, hidden),
        "n_dim": n_dim,
        "hidden": hidden,
    }


def inversed_dynamics(t, x, params, *, t_max=1.0, batch_tile=1024):
    """Pallas-backed forward of InversedDynamics(dynamics, t_max)(t, x).

    Returns [-dx, -dlogp], each at exact (n_batch, ...) shape — no padding or
    slicing glue around the kernel.
    """
    n_batch, n_dim = x.shape
    assert n_dim == params["n_dim"]
    hidden = params["hidden"]

    x = x.astype(jnp.float32)  # no-op when already f32

    # Batch tile: as large as possible (amortize per-grid-step overhead) but
    # capped at ~batch/2 so the grid has >=2 steps whenever the batch allows,
    # keeping both v7x TensorCores busy under dimension_semantics=("parallel",).
    # VMEM is not a constraint at these widths (even tb=2048 fits comfortably).
    half = -(-n_batch // 2)
    tb = max(8, min(batch_tile, _round_up(half, 8)))
    grid = (pl.cdiv(n_batch, tb),)  # ragged final tile is allowed

    # Inverse-time scalar, computed outside the kernel (runtime value).
    t_rev = (jnp.asarray(t_max, jnp.float32)
             - jnp.asarray(t, jnp.float32)).reshape((1,))

    resident = lambda i: (0, 0)  # weights/biases/c: same tiny block every step

    neg_dx, neg_dlogp = pl.pallas_call(
        _inversed_dynamics_kernel,
        out_shape=(
            jax.ShapeDtypeStruct((n_batch, n_dim), jnp.float32),  # -dx
            jax.ShapeDtypeStruct((n_batch, 1), jnp.float32),      # -dlogp
        ),
        grid=grid,
        in_specs=[
            pl.BlockSpec(memory_space=pltpu.MemorySpace.SMEM),   # t_rev scalar
            pl.BlockSpec((tb, n_dim), lambda i: (i, 0)),         # x (pipelined)
            pl.BlockSpec((n_dim, hidden), resident),             # W1 (bf16)
            pl.BlockSpec((1, hidden), resident),                 # b1
            pl.BlockSpec((hidden, n_dim), resident),             # -W2 (bf16)
            pl.BlockSpec((1, n_dim), resident),                  # -b2
            pl.BlockSpec((1, hidden), resident),                 # c
        ],
        out_specs=(
            pl.BlockSpec((tb, n_dim), lambda i: (i, 0)),
            pl.BlockSpec((tb, 1), lambda i: (i, 0)),
        ),
        compiler_params=pltpu.CompilerParams(
            dimension_semantics=("parallel",)),
    )(t_rev, x, params["w1"], params["b1"], params["neg_w2"],
      params["neg_b2"], params["c"])

    return [neg_dx, neg_dlogp]


def _reference_f32(t, x, w1, b1, w2, b2, *, t_max=1.0):
    t_rev = t_max - t
    h = x @ w1 + t_rev * b1[None, :]
    a = jnp.tanh(h)
    dx = a @ w2 + b2[None, :]
    c = jnp.sum(w1 * w2.T, axis=0)
    div = jnp.sum((1.0 - a * a) * c[None, :], axis=-1, keepdims=True)
    return [-dx, div]  # [-dx, -dlogp] with dlogp = -div


def _reference_bf16_ingest(t, x, w1, b1, w2, b2, *, t_max=1.0):
    # Mirrors the kernel's bf16 MXU ingest / f32 accumulation exactly.
    t_rev = t_max - t
    xb = x.astype(jnp.bfloat16).astype(jnp.float32)
    w1b = w1.astype(jnp.bfloat16).astype(jnp.float32)
    w2b = w2.astype(jnp.bfloat16).astype(jnp.float32)
    h = xb @ w1b + t_rev * b1[None, :]
    a = jnp.tanh(h)
    ab = a.astype(jnp.bfloat16).astype(jnp.float32)
    dx = ab @ w2b + b2[None, :]
    c = jnp.sum(w1 * w2.T, axis=0)
    div = jnp.sum((1.0 - a * a) * c[None, :], axis=-1, keepdims=True)
    return [-dx, div]


if __name__ == "__main__":
    n_dim, hidden = 16, 32
    t_max = 1.0
    t = 0.3

    key = jax.random.PRNGKey(0)
    kx1, kx2, k1, kb1, k2, kb2 = jax.random.split(key, 6)
    w1 = jax.random.normal(k1, (n_dim, hidden), dtype=jnp.float32) * 0.1
    b1 = jax.random.normal(kb1, (hidden,), dtype=jnp.float32) * 0.1
    w2 = jax.random.normal(k2, (hidden, n_dim), dtype=jnp.float32) * 0.1
    b2 = jax.random.normal(kb2, (n_dim,), dtype=jnp.float32) * 0.1

    params = prepare_inversed_dynamics_params(w1, b1, w2, b2)

    # Case 1: small batch, single tile.  Case 2: batch=20 -> tb=16, 2 grid
    # steps with a ragged final tile (exercises pipelining + boundary masking).
    for n_batch, kx in ((8, kx1), (20, kx2)):
        x = jax.random.normal(kx, (n_batch, n_dim), dtype=jnp.float32)

        neg_dx, neg_dlogp = inversed_dynamics(t, x, params, t_max=t_max)
        jax.block_until_ready(neg_dx)
        jax.block_until_ready(neg_dlogp)

        assert neg_dx.shape == (n_batch, n_dim)
        assert neg_dlogp.shape == (n_batch, 1)

        # Tight check against a reference with identical bf16 MXU ingest.
        ref_dx_b, ref_dlogp_b = _reference_bf16_ingest(t, x, w1, b1, w2, b2,
                                                       t_max=t_max)
        assert jnp.allclose(neg_dx, ref_dx_b, atol=1e-4, rtol=1e-4)
        assert jnp.allclose(neg_dlogp, ref_dlogp_b, atol=1e-4, rtol=1e-4)

        # Sanity check against the pure-f32 reference (bf16 ingest tolerance).
        ref_dx, ref_dlogp = _reference_f32(t, x, w1, b1, w2, b2, t_max=t_max)
        assert jnp.allclose(neg_dx, ref_dx, atol=2e-2, rtol=2e-2)
        assert jnp.allclose(neg_dlogp, ref_dlogp, atol=2e-2, rtol=2e-2)

    # TODO(synk): if CNF log-likelihoods must match an f32 PyTorch flow bit-
    # tightly, compute c from the bf16-rounded weights (or run the MXU path in
    # f32) so dlogp is the divergence of exactly the flow that produced dx.
    print("KERNEL_OK")
</pallas_src>

<mosaic_0001>
module attributes {stable_mosaic.version = 11 : i64} {
  func.func @_inversed_dynamics_kernel(%arg0: i32, %arg1: memref<1xf32, #tpu.memory_space<smem>>, %arg2: memref<8x16xf32, #tpu.memory_space<vmem>>, %arg3: memref<16x32xbf16, #tpu.memory_space<vmem>>, %arg4: memref<1x32xf32, #tpu.memory_space<vmem>>, %arg5: memref<32x16xbf16, #tpu.memory_space<vmem>>, %arg6: memref<1x16xf32, #tpu.memory_space<vmem>>, %arg7: memref<1x32xf32, #tpu.memory_space<vmem>>, %arg8: memref<8x16xf32, #tpu.memory_space<vmem>>, %arg9: memref<8x1xf32, #tpu.memory_space<vmem>>) attributes {dimension_semantics = [#tpu.dimension_semantics<parallel>], iteration_bounds = array<i64: 1>, scalar_prefetch = 0 : i64, scratch_operands = 0 : i64, tpu.core_type = #tpu.core_type<tc>, window_params = [{transform_indices = @transform_0, window_bounds = array<i64: 1>}, {transform_indices = @transform_1, window_bounds = array<i64: 8, 16>}, {pipeline_mode = #tpu.pipeline_mode<synchronous>, transform_indices = @transform_2, window_bounds = array<i64: 16, 32>}, {pipeline_mode = #tpu.pipeline_mode<synchronous>, transform_indices = @transform_3, window_bounds = array<i64: 1, 32>}, {pipeline_mode = #tpu.pipeline_mode<synchronous>, transform_indices = @transform_4, window_bounds = array<i64: 32, 16>}, {pipeline_mode = #tpu.pipeline_mode<synchronous>, transform_indices = @transform_5, window_bounds = array<i64: 1, 16>}, {pipeline_mode = #tpu.pipeline_mode<synchronous>, transform_indices = @transform_6, window_bounds = array<i64: 1, 32>}, {transform_indices = @transform_7, window_bounds = array<i64: 8, 16>}, {transform_indices = @transform_8, window_bounds = array<i64: 8, 1>}]} {
    %c0 = arith.constant 0 : index
    %0 = memref.load %arg1[%c0] : memref<1xf32, #tpu.memory_space<smem>>
    %c0_0 = arith.constant 0 : index
    %c0_1 = arith.constant 0 : index
    %1 = vector.load %arg2[%c0_0, %c0_1] : memref<8x16xf32, #tpu.memory_space<vmem>>, vector<8x16xf32>
    %2 = arith.truncf %1 : vector<8x16xf32> to vector<8x16xbf16>
    %c0_2 = arith.constant 0 : index
    %c0_3 = arith.constant 0 : index
    %3 = vector.load %arg3[%c0_2, %c0_3] : memref<16x32xbf16, #tpu.memory_space<vmem>>, vector<16x32xbf16>
    %cst = arith.constant dense<0.000000e+00> : vector<8x32xf32>
    %4 = tpu.matmul %2, %3, %cst {dimension_numbers = #tpu.dot_dimension_numbers<[1], [0], [0], [1], [0, 0, 1, 1], [], []>} : vector<8x16xbf16>, vector<16x32xbf16>, vector<8x32xf32> -> vector<8x32xf32>
    %c0_4 = arith.constant 0 : index
    %c0_5 = arith.constant 0 : index
    %5 = vector.load %arg4[%c0_4, %c0_5] : memref<1x32xf32, #tpu.memory_space<vmem>>, vector<1x32xf32>
    %6 = vector.broadcast %0 : f32 to vector<1x32xf32>
    %7 = arith.mulf %6, %5 : vector<1x32xf32>
    %8 = vector.broadcast %7 : vector<1x32xf32> to vector<8x32xf32>
    %9 = arith.addf %4, %8 : vector<8x32xf32>
    %10 = math.tanh %9 : vector<8x32xf32>
    %11 = arith.truncf %10 : vector<8x32xf32> to vector<8x32xbf16>
    %c0_6 = arith.constant 0 : index
    %c0_7 = arith.constant 0 : index
    %12 = vector.load %arg5[%c0_6, %c0_7] : memref<32x16xbf16, #tpu.memory_space<vmem>>, vector<32x16xbf16>
    %cst_8 = arith.constant dense<0.000000e+00> : vector<8x16xf32>
    %13 = tpu.matmul %11, %12, %cst_8 {dimension_numbers = #tpu.dot_dimension_numbers<[1], [0], [0], [1], [0, 0, 1, 1], [], []>} : vector<8x32xbf16>, vector<32x16xbf16>, vector<8x16xf32> -> vector<8x16xf32>
    %c0_9 = arith.constant 0 : index
    %c0_10 = arith.constant 0 : index
    %14 = vector.load %arg6[%c0_9, %c0_10] : memref<1x16xf32, #tpu.memory_space<vmem>>, vector<1x16xf32>
    %15 = vector.broadcast %14 : vector<1x16xf32> to vector<8x16xf32>
    %16 = arith.addf %13, %15 : vector<8x16xf32>
    %c0_11 = arith.constant 0 : index
    %c0_12 = arith.constant 0 : index
    %17 = vector.load %arg8[%c0_11, %c0_12] : memref<8x16xf32, #tpu.memory_space<vmem>>, vector<8x16xf32>
    tpu.vector_store %arg8[%c0_11, %c0_12], %16 {strides = array<i32>} : memref<8x16xf32, #tpu.memory_space<vmem>>, vector<8x16xf32>,
    %18 = arith.mulf %10, %10 : vector<8x32xf32>
    %cst_13 = arith.constant 1.000000e+00 : f32
    %19 = vector.broadcast %cst_13 : f32 to vector<8x32xf32>
    %20 = arith.subf %19, %18 : vector<8x32xf32>
    %c0_14 = arith.constant 0 : index
    %c0_15 = arith.constant 0 : index
    %21 = vector.load %arg7[%c0_14, %c0_15] : memref<1x32xf32, #tpu.memory_space<vmem>>, vector<1x32xf32>
    %22 = vector.broadcast %21 : vector<1x32xf32> to vector<8x32xf32>
    %23 = arith.mulf %20, %22 : vector<8x32xf32>
    %cst_16 = arith.constant dense<0.000000e+00> : vector<8xf32>
    %24 = vector.multi_reduction <add>, %23, %cst_16 [1] : vector<8x32xf32> to vector<8xf32>
    %25 = vector.shape_cast %24 : vector<8xf32> to vector<8x1xf32>
    %c0_17 = arith.constant 0 : index
    %c0_18 = arith.constant 0 : index
    %26 = vector.load %arg9[%c0_17, %c0_18] : memref<8x1xf32, #tpu.memory_space<vmem>>, vector<8x1xf32>
    tpu.vector_store %arg9[%c0_17, %c0_18], %25 {strides = array<i32>} : memref<8x1xf32, #tpu.memory_space<vmem>>, vector<8x1xf32>,
    return
  }
  func.func @transform_0(%arg0: i32) -> i32 {
    %c0_i32 = arith.constant 0 : i32
    %c0_i32_0 = arith.constant 0 : i32
    return %c0_i32 : i32
  }
  func.func @transform_1(%arg0: i32) -> (i32, i32) {
    %c0_i32 = arith.constant 0 : i32
    %c0_i32_0 = arith.constant 0 : i32
    return %arg0, %c0_i32 : i32, i32
  }
  func.func @transform_2(%arg0: i32) -> (i32, i32) {
    %c0_i32 = arith.constant 0 : i32
    %c0_i32_0 = arith.constant 0 : i32
    %c0_i32_1 = arith.constant 0 : i32
    return %c0_i32, %c0_i32_0 : i32, i32
  }
  func.func @transform_3(%arg0: i32) -> (i32, i32) {
    %c0_i32 = arith.constant 0 : i32
    %c0_i32_0 = arith.constant 0 : i32
    %c0_i32_1 = arith.constant 0 : i32
    return %c0_i32, %c0_i32_0 : i32, i32
  }
  func.func @transform_4(%arg0: i32) -> (i32, i32) {
    %c0_i32 = arith.constant 0 : i32
    %c0_i32_0 = arith.constant 0 : i32
    %c0_i32_1 = arith.constant 0 : i32
    return %c0_i32, %c0_i32_0 : i32, i32
  }
  func.func @transform_5(%arg0: i32) -> (i32, i32) {
    %c0_i32 = arith.constant 0 : i32
    %c0_i32_0 = arith.constant 0 : i32
    %c0_i32_1 = arith.constant 0 : i32
    return %c0_i32, %c0_i32_0 : i32, i32
  }
  func.func @transform_6(%arg0: i32) -> (i32, i32) {
    %c0_i32 = arith.constant 0 : i32
    %c0_i32_0 = arith.constant 0 : i32
    %c0_i32_1 = arith.constant 0 : i32
    return %c0_i32, %c0_i32_0 : i32, i32
  }
  func.func @transform_7(%arg0: i32) -> (i32, i32) {
    %c0_i32 = arith.constant 0 : i32
    %c0_i32_0 = arith.constant 0 : i32
    return %arg0, %c0_i32 : i32, i32
  }
  func.func @transform_8(%arg0: i32) -> (i32, i32) {
    %c0_i32 = arith.constant 0 : i32
    %c0_i32_0 = arith.constant 0 : i32
    return %arg0, %c0_i32 : i32, i32
  }
}

</mosaic_0001>

<bundles_post_ra>
// kernel: tpu_custom_call.1
= control target key start
LH: loop header
LB: loop body
LE: loop exit
PB: predicated region body
PF: predicated region fallthrough
CT: control target
= control target key end

     0   :  { %v256_v1 = vmov 0.0   ;;  %vm257_vm0 = vmmov 0   ;;  %vm51_vm1 = vcmask 130048   ;;  %s345_s0 = inlined_call_operand.<no memory space> [shape: f32[1], index: 0, kind: input, shape index: {}]   ;;  %s346_s1 = inlined_call_operand.vmem [shape: f32[8,16], index: 1, kind: input, shape index: {}]   ;;  %s347_s2 = inlined_call_operand.vmem [shape: bf16[16,32], index: 2, kind: input, shape index: {}]   ;;  %s348_s3 = inlined_call_operand.vmem [shape: f32[1,32], index: 3, kind: input, shape index: {}]   ;;  %s349_s4 = inlined_call_operand.vmem [shape: bf16[32,16], index: 4, kind: input, shape index: {}]   ;;  %s350_s5 = inlined_call_operand.vmem [shape: f32[1,16], index: 5, kind: input, shape index: {}]   ;;  %s351_s6 = inlined_call_operand.vmem [shape: f32[1,32], index: 6, kind: input, shape index: {}]   ;;  %s352_s7 = inlined_call_operand.hbm [shape: f32[8,16], index: 7, kind: output, shape index: {0}]   ;;  %s353_s8 = inlined_call_operand.vmem [shape: f32[8,1], index: 8, kind: output, shape index: {1}]  }
   0x1   :  { %v227_v0 = vld [vmem:[%s347_s2] sm:$0xff]   ;;  %210 = vmatprep.subr.bf16.mxu0 %v256_v1  ;;  %216 = vmatprep.subr.bf16.mxu1 %v256_v1 }
   0x2   :  { %v32_v2 = vld [vmem:[%s346_s1] sm:$0xff]  ;;  %211 = vmatpush3.bf16.msra.mxu0 %v227_v0  ;;  %212 = vmatprep.mubr.msk.bf16.mxu0 %vm257_vm0, %v256_v1 }
   0x3   :  { %v33_v3 = vpack.c.bf16 %v32_v2, %v32_v2  ;;  %220 = vmatprep.mubr.msk.bf16.mxu1 %vm257_vm0, %v256_v1 }
   0x4   :  { %15 = vsyncpa [#allocation4], 0  ;;  %v228_v4 = vld [vmem:[%s349_s4] sm:$0xff]   ;;  %v229_v5 = vld [vmem:[%s349_s4 + $0x8] sm:$0xff]   ;;  %v40_v6 = vlaneseq  ;;  %v37_v9 = vstv %s345_s0  ;;  %vm120_vm2 = vcmask 261120   ;;  %vm178_vm3 = vcmask 7168  }
   0x5   :  { %213 = vmatmul.mubr.msk.bf16.vlgmr.msra.gmra.mrb[0].mxu0 %vm51_vm1, %v33_v3  ;;  %217 = vmatpush3.bf16.msra.mxu1 %v228_v4  ;;  %v36_v8 = vld [vmem:[%s348_s3] sm:$0x1]  ;;  %s258_s18 = smov [#allocation3]  }
   0x6   :  { %218 = vmatprep.subr.bf16.mxu1 %v256_v1  ;;  %v41_v7 = vshrl.u32 %v40_v6, 7  ;;  %v38_v10 = vmul.f32 %v37_v9, %v36_v8  ;;  %v204_v21 = vld [vmem:[%s351_s6] ss:$0 sm:$0xff]  ;;  %s186_s19 = sshll.u32 %s258_s18, 4  ;;  %s187_s19 = int_to_ptr.vmem [resolvable:$true] %s186_s19 }
   0x7   :  { %v200_v26 = vld [vmem:[%s350_s5] ss:$0 sm:$0xff]  ;;  %s232_s6 = scalar_lea.vmem %s187_s19, 128  ;;  %p237_p1 = scmp.lt.s32.totalorder %s187_s19, %s187_s19 }
   0x8   :  { %v42_v11 = vsub.s32 0, %v41_v7  ;;  %p233_p0 = scmp.ne.s32.totalorder %s187_s19, %s232_s6  ;;  %p238_p2 = scmp.lt.s32.totalorder %s232_s6, %s232_s6 }
   0x9   :  { %219 = vmatpush3.bf16.msra.mxu1 %v229_v5 }
   0xa   :  { %v43_v12 = vrot.slane %v38_v10, %v42_v11  ;;  %p239_p3 = por %p238_p2, %p237_p1 }
   0xc   :  { %p240_p4 = pnand %p239_p3, %p233_p0 }
  0xd8   :  { %v89_v13 = vpop.f32.mrb[0].mxu0 }
  0xd9   :  { %v90_v14 = vadd.f32 %v89_v13, %v43_v12  ;;  %v214_v15 = vpop.f32.mrb[1].mxu0 }
  0xda   :  { %v92_v16 = vpop.f32.mrb[2].mxu0 }
  0xdb   :  { %230 = vtanh.f32 %v90_v14  ;;  %v215_v17 = vpop.f32.mrb[3].mxu0 }
  0xe5   :  { %v231_v18 = vpop.eup %230 }
  0xe6   :  { %v96_v19 = vpack.c.bf16 %v231_v18, %v231_v18  ;;  %v165_v20 = vmul.f32 %v231_v18, %v231_v18 }
  0xe8   :  { %221 = vmatmul.mubr.msk.bf16.vlgmr.msra.gmra.mrb[0].mxu1 %vm120_vm2, %v96_v19  ;;  %v166_v22 = vsub.f32 1.0, %v165_v20 }
  0xea   :  { %v174_v23 = vmul.f32 %v204_v21, %v166_v22 }
  0xec   :  { %v175_v24 = vsel %vm120_vm2, %v174_v23, 0.0 }
  0xed   :  { %176 = vadd.xlane.f32.xlu0 %v175_v24 }
 0x17a   :  { %v177_v25 = vpop.xlane.xlu0 %176 }
 0x17b   :  { %179 = vst.msk [vmem:[%s353_s8] sm:$0xff] %vm178_vm3, %v177_v25 }
 0x1bb   :  { %v158_v27 = vpop.f32.mrb[0].mxu1 }
 0x1bc   :  { %v159_v28 = vadd.f32 %v200_v26, %v158_v27  ;;  %v222_v29 = vpop.f32.mrb[1].mxu1 }
 0x1bd   :  { %v161_v30 = vpop.f32.mrb[2].mxu1 }
 0x1be   :  { %164 = vst.msk [vmem:[#allocation3] sm:$0xff] %vm51_vm1, %v159_v28  ;;  %v223_v31 = vpop.f32.mrb[3].mxu1 }
 0x1bf   :  { %243 = shalt.err (!%p240_p4)
}
 0x1c0   :  { %s244_s5 = scalar_lea.hbm %s352_s7, 128 }
 0x1c1   :  { %p245_p5 = scmp.ne.s32.totalorder %s352_s7, %s244_s5  ;;  %p248_p6 = scmp.lt.u32.totalorder %s244_s5, %s352_s7 }
 0x1c3   :  { %p250_p7 = pnand %p248_p6, %p245_p5 }
 0x1c5   :  { %253 = shalt.err (!%p250_p7)
}
 0x1c6   :  { %189 = dma.vmem_to_hbm [thread:$0]  %s187_s19, 128, %s352_s7, [#allocation4]  }
 0x1c7   :  { %254 = dma.done.wait [#allocation4], 128  }
 0x1c8   :  { %255 = vsyncadd [#allocation4], 4294967168 }
 0x1c9   :  { %197 = vsyncpa [#allocation4], 1 }

</bundles_post_ra>
